<compile_context>
chip_gen: v7x
topology: tpu7x:2x2x1
jax: 0.10.0
libtpu: 0.0.40
codegen_flags: <defaults>
</compile_context>

<pallas_src>
import jax
import jax.numpy as jnp
from jax import lax
from jax.experimental import pallas as pl
from jax.experimental.pallas import tpu as pltpu

INPUT_SIZE = 10
HIDDEN_SIZES = [32, 16]
OUTPUT_SIZE = 1

MAX_BATCH_TILE = 8192   # rows per grid step (x VMEM buffer ~4 MiB lane-padded)
W3_ROW_PAD = 8          # pad the single output row of W3 to a full sublane group


def _round_up(n, m):
    return ((n + m - 1) // m) * m


def _mlp_kernel(x_ref, w1_ref, b1_ref, w2_ref, b2_ref, w3_ref, b3_ref, o_ref):
    """Fused 3-layer MLP on one batch tile, transposed (features x batch) layout."""
    x = x_ref[...]                                       # [tile, 10]

    # Linear(10 -> 32): h1[32, tile] = W1 @ x.T  (rhs-transposed MXU matmul;
    # this also moves batch onto the lane axis for the rest of the kernel).
    h1 = lax.dot_general(w1_ref[...], x, (((1,), (1,)), ((), ())),
                         preferred_element_type=jnp.float32)
    h1 = jnp.maximum(h1 + b1_ref[...], 0.0)              # ReLU; Dropout -> identity (eval)

    # Linear(32 -> 16): h2[16, tile] = W2 @ h1
    h2 = lax.dot_general(w2_ref[...], h1, (((1,), (0,)), ((), ())),
                         preferred_element_type=jnp.float32)
    h2 = jnp.tanh(h2 + b2_ref[...])                      # Tanh; Dropout -> identity (eval)

    # Linear(16 -> 1): w3 rows 1..7 are zero padding; keep row 0 only.
    o8 = lax.dot_general(w3_ref[...], h2, (((1,), (0,)), ((), ())),
                         preferred_element_type=jnp.float32)      # [8, tile]
    o_ref[...] = (o8[0:1, :] + b3_ref[...]).astype(o_ref.dtype)   # [1, tile], lane-dense


def prepare_params(params):
    """Reshape/pad params once, outside the per-call hot path.

    Weights stay in nn.Linear's (out_features, in_features) layout; biases
    become column vectors so they lane-broadcast against [features, batch]
    activations; only w3's single output row is zero-padded to 8 sublanes.
    """
    w3 = jnp.zeros((W3_ROW_PAD, HIDDEN_SIZES[1]), jnp.float32)
    w3 = w3.at[:OUTPUT_SIZE, :].set(params["w3"].astype(jnp.float32))
    return {
        "w1": params["w1"].astype(jnp.float32),            # (32, 10)
        "b1": params["b1"].astype(jnp.float32)[:, None],    # (32, 1)
        "w2": params["w2"].astype(jnp.float32),            # (16, 32)
        "b2": params["b2"].astype(jnp.float32)[:, None],    # (16, 1)
        "w3": w3,                                          # (8, 16)
        "b3": params["b3"].astype(jnp.float32)[:, None],    # (1, 1)
    }


@jax.jit
def generalized_model_forward(x, padded_params):
    """x: [B, INPUT_SIZE] float32. padded_params: output of prepare_params()."""
    B = x.shape[0]

    # Tile selection: as large as possible (amortize ~0.35 us per-step cost) but
    # balanced so batch padding waste stays small; multi-step grids appear
    # naturally for large B (and shard across v7x's two TensorCores via
    # dimension_semantics=("parallel",)).
    b128 = _round_up(max(B, 1), 128)
    n_steps = pl.cdiv(b128, MAX_BATCH_TILE)
    tile = _round_up(pl.cdiv(b128, n_steps), 128)
    b_pad = _round_up(B, tile)

    xp = jnp.pad(x.astype(jnp.float32), ((0, b_pad - B), (0, 0)))  # batch pad only

    grid = (b_pad // tile,)
    resident = lambda r, c: pl.BlockSpec((r, c), lambda i: (0, 0))

    flops = 2 * b_pad * (INPUT_SIZE * 32 + 32 * 16 + 16 * OUTPUT_SIZE)
    bytes_accessed = b_pad * (INPUT_SIZE + OUTPUT_SIZE) * 4 + 4096
    transcendentals = b_pad * 16

    out = pl.pallas_call(
        _mlp_kernel,
        out_shape=jax.ShapeDtypeStruct((1, b_pad), jnp.float32),
        grid_spec=pltpu.PrefetchScalarGridSpec(
            num_scalar_prefetch=0,
            grid=grid,
            in_specs=[
                pl.BlockSpec((tile, INPUT_SIZE), lambda i: (i, 0)),  # x tile
                resident(32, INPUT_SIZE),        # w1 (out, in)
                resident(32, 1),                 # b1
                resident(16, 32),                # w2 (out, in)
                resident(16, 1),                 # b2
                resident(W3_ROW_PAD, 16),        # w3 (row-padded)
                resident(1, 1),                  # b3
            ],
            out_specs=pl.BlockSpec((1, tile), lambda i: (0, i)),
        ),
        compiler_params=pltpu.CompilerParams(
            dimension_semantics=("parallel",),
            vmem_limit_bytes=32 * 1024 * 1024),
        cost_estimate=pl.CostEstimate(
            flops=flops, transcendentals=transcendentals,
            bytes_accessed=bytes_accessed),
    )(xp, padded_params["w1"], padded_params["b1"],
      padded_params["w2"], padded_params["b2"],
      padded_params["w3"], padded_params["b3"])

    return out[0, :B][:, None]


def init_params(key):
    """PyTorch-style init: U(-1/sqrt(fan_in), 1/sqrt(fan_in)).

    Weights use nn.Linear's native (out_features, in_features) layout.
    """
    sizes = [INPUT_SIZE] + HIDDEN_SIZES + [OUTPUT_SIZE]
    params = {}
    for li, (fan_in, fan_out) in enumerate(zip(sizes[:-1], sizes[1:]), start=1):
        key, kw, kb = jax.random.split(key, 3)
        bound = 1.0 / (fan_in ** 0.5)
        params[f"w{li}"] = jax.random.uniform(
            kw, (fan_out, fan_in), jnp.float32, minval=-bound, maxval=bound)
        params[f"b{li}"] = jax.random.uniform(
            kb, (fan_out,), jnp.float32, minval=-bound, maxval=bound)
    return params


def _reference_forward(x, params):
    h = jnp.maximum(x @ params["w1"].T + params["b1"], 0.0)
    h = jnp.tanh(h @ params["w2"].T + params["b2"])
    return h @ params["w3"].T + params["b3"]


if __name__ == "__main__":
    key = jax.random.PRNGKey(0)
    kx, kp = jax.random.split(key)

    batch = 13  # deliberately not tile-aligned: exercises batch pad + slice path
    x = jax.random.normal(kx, (batch, INPUT_SIZE), dtype=jnp.float32)
    params = init_params(kp)
    padded_params = prepare_params(params)   # padded once, outside the hot path

    out = generalized_model_forward(x, padded_params)
    out = jax.block_until_ready(out)

    ref = _reference_forward(x, params)
    assert out.shape == (batch, OUTPUT_SIZE), out.shape
    assert jnp.allclose(out, ref, atol=1e-5, rtol=1e-5), (
        "mismatch vs pure-JAX reference")

    print("KERNEL_OK")
</pallas_src>

<mosaic_0001>
module attributes {stable_mosaic.version = 11 : i64} {
  func.func @_mlp_kernel(%arg0: i32, %arg1: memref<128x10xf32, #tpu.memory_space<vmem>>, %arg2: memref<32x10xf32, #tpu.memory_space<vmem>>, %arg3: memref<32x1xf32, #tpu.memory_space<vmem>>, %arg4: memref<16x32xf32, #tpu.memory_space<vmem>>, %arg5: memref<16x1xf32, #tpu.memory_space<vmem>>, %arg6: memref<8x16xf32, #tpu.memory_space<vmem>>, %arg7: memref<1x1xf32, #tpu.memory_space<vmem>>, %arg8: memref<1x128xf32, #tpu.memory_space<vmem>>) attributes {dimension_semantics = [#tpu.dimension_semantics<parallel>], iteration_bounds = array<i64: 1>, scalar_prefetch = 0 : i64, scratch_operands = 0 : i64, tpu.core_type = #tpu.core_type<tc>, window_params = [{transform_indices = @transform_0, window_bounds = array<i64: 128, 10>}, {pipeline_mode = #tpu.pipeline_mode<synchronous>, transform_indices = @transform_1, window_bounds = array<i64: 32, 10>}, {pipeline_mode = #tpu.pipeline_mode<synchronous>, transform_indices = @transform_2, window_bounds = array<i64: 32, 1>}, {pipeline_mode = #tpu.pipeline_mode<synchronous>, transform_indices = @transform_3, window_bounds = array<i64: 16, 32>}, {pipeline_mode = #tpu.pipeline_mode<synchronous>, transform_indices = @transform_4, window_bounds = array<i64: 16, 1>}, {pipeline_mode = #tpu.pipeline_mode<synchronous>, transform_indices = @transform_5, window_bounds = array<i64: 8, 16>}, {pipeline_mode = #tpu.pipeline_mode<synchronous>, transform_indices = @transform_6, window_bounds = array<i64: 1, 1>}, {transform_indices = @transform_7, window_bounds = array<i64: 1, 128>}]} {
    %c0 = arith.constant 0 : index
    %c0_0 = arith.constant 0 : index
    %0 = vector.load %arg1[%c0, %c0_0] : memref<128x10xf32, #tpu.memory_space<vmem>>, vector<128x10xf32>
    %c0_1 = arith.constant 0 : index
    %c0_2 = arith.constant 0 : index
    %1 = vector.load %arg2[%c0_1, %c0_2] : memref<32x10xf32, #tpu.memory_space<vmem>>, vector<32x10xf32>
    %cst = arith.constant dense<0.000000e+00> : vector<32x128xf32>
    %2 = tpu.matmul %1, %0, %cst {dimension_numbers = #tpu.dot_dimension_numbers<[1], [1], [0], [0], [0, 0, 1, 0], [], []>} : vector<32x10xf32>, vector<128x10xf32>, vector<32x128xf32> -> vector<32x128xf32>
    %c0_3 = arith.constant 0 : index
    %c0_4 = arith.constant 0 : index
    %3 = vector.load %arg3[%c0_3, %c0_4] : memref<32x1xf32, #tpu.memory_space<vmem>>, vector<32x1xf32>
    %4 = vector.broadcast %3 : vector<32x1xf32> to vector<32x128xf32>
    %5 = arith.addf %2, %4 : vector<32x128xf32>
    %cst_5 = arith.constant 0.000000e+00 : f32
    %6 = vector.broadcast %cst_5 : f32 to vector<32x128xf32>
    %7 = arith.maximumf %5, %6 : vector<32x128xf32>
    %c0_6 = arith.constant 0 : index
    %c0_7 = arith.constant 0 : index
    %8 = vector.load %arg4[%c0_6, %c0_7] : memref<16x32xf32, #tpu.memory_space<vmem>>, vector<16x32xf32>
    %cst_8 = arith.constant dense<0.000000e+00> : vector<16x128xf32>
    %9 = tpu.matmul %8, %7, %cst_8 {dimension_numbers = #tpu.dot_dimension_numbers<[1], [0], [0], [1], [0, 0, 1, 1], [], []>} : vector<16x32xf32>, vector<32x128xf32>, vector<16x128xf32> -> vector<16x128xf32>
    %c0_9 = arith.constant 0 : index
    %c0_10 = arith.constant 0 : index
    %10 = vector.load %arg5[%c0_9, %c0_10] : memref<16x1xf32, #tpu.memory_space<vmem>>, vector<16x1xf32>
    %11 = vector.broadcast %10 : vector<16x1xf32> to vector<16x128xf32>
    %12 = arith.addf %9, %11 : vector<16x128xf32>
    %13 = math.tanh %12 : vector<16x128xf32>
    %c0_11 = arith.constant 0 : index
    %c0_12 = arith.constant 0 : index
    %14 = vector.load %arg6[%c0_11, %c0_12] : memref<8x16xf32, #tpu.memory_space<vmem>>, vector<8x16xf32>
    %cst_13 = arith.constant dense<0.000000e+00> : vector<8x128xf32>
    %15 = tpu.matmul %14, %13, %cst_13 {dimension_numbers = #tpu.dot_dimension_numbers<[1], [0], [0], [1], [0, 0, 1, 1], [], []>} : vector<8x16xf32>, vector<16x128xf32>, vector<8x128xf32> -> vector<8x128xf32>
    %16 = vector.extract_strided_slice %15 {offsets = [0, 0], sizes = [1, 128], strides = [1, 1]} : vector<8x128xf32> to vector<1x128xf32>
    %c0_14 = arith.constant 0 : index
    %c0_15 = arith.constant 0 : index
    %17 = vector.load %arg7[%c0_14, %c0_15] : memref<1x1xf32, #tpu.memory_space<vmem>>, vector<1x1xf32>
    %18 = vector.broadcast %17 : vector<1x1xf32> to vector<1x128xf32>
    %19 = arith.addf %16, %18 : vector<1x128xf32>
    %c0_16 = arith.constant 0 : index
    %c0_17 = arith.constant 0 : index
    %20 = vector.load %arg8[%c0_16, %c0_17] : memref<1x128xf32, #tpu.memory_space<vmem>>, vector<1x128xf32>
    tpu.vector_store %arg8[%c0_16, %c0_17], %19 {strides = array<i32>} : memref<1x128xf32, #tpu.memory_space<vmem>>, vector<1x128xf32>,
    return
  }
  func.func @transform_0(%arg0: i32) -> (i32, i32) {
    %c0_i32 = arith.constant 0 : i32
    %c0_i32_0 = arith.constant 0 : i32
    return %arg0, %c0_i32 : i32, i32
  }
  func.func @transform_1(%arg0: i32) -> (i32, i32) {
    %c0_i32 = arith.constant 0 : i32
    %c0_i32_0 = arith.constant 0 : i32
    %c0_i32_1 = arith.constant 0 : i32
    return %c0_i32, %c0_i32_0 : i32, i32
  }
  func.func @transform_2(%arg0: i32) -> (i32, i32) {
    %c0_i32 = arith.constant 0 : i32
    %c0_i32_0 = arith.constant 0 : i32
    %c0_i32_1 = arith.constant 0 : i32
    return %c0_i32, %c0_i32_0 : i32, i32
  }
  func.func @transform_3(%arg0: i32) -> (i32, i32) {
    %c0_i32 = arith.constant 0 : i32
    %c0_i32_0 = arith.constant 0 : i32
    %c0_i32_1 = arith.constant 0 : i32
    return %c0_i32, %c0_i32_0 : i32, i32
  }
  func.func @transform_4(%arg0: i32) -> (i32, i32) {
    %c0_i32 = arith.constant 0 : i32
    %c0_i32_0 = arith.constant 0 : i32
    %c0_i32_1 = arith.constant 0 : i32
    return %c0_i32, %c0_i32_0 : i32, i32
  }
  func.func @transform_5(%arg0: i32) -> (i32, i32) {
    %c0_i32 = arith.constant 0 : i32
    %c0_i32_0 = arith.constant 0 : i32
    %c0_i32_1 = arith.constant 0 : i32
    return %c0_i32, %c0_i32_0 : i32, i32
  }
  func.func @transform_6(%arg0: i32) -> (i32, i32) {
    %c0_i32 = arith.constant 0 : i32
    %c0_i32_0 = arith.constant 0 : i32
    %c0_i32_1 = arith.constant 0 : i32
    return %c0_i32, %c0_i32_0 : i32, i32
  }
  func.func @transform_7(%arg0: i32) -> (i32, i32) {
    %c0_i32 = arith.constant 0 : i32
    %c0_i32_0 = arith.constant 0 : i32
    return %c0_i32, %arg0 : i32, i32
  }
}

</mosaic_0001>

<bundles_post_ra>
// kernel: generalized_model_forward.1
= control target key start
LH: loop header
LB: loop body
LE: loop exit
PB: predicated region body
PF: predicated region fallthrough
CT: control target
= control target key end

     0   :  { %vm72_vm0 = vcmask 80896   ;;  %v588_v3 = vmov 0   ;;  %vm236_vm2 = vcmask 261120   ;;  %v589_v58 = vmov 0.0|0.0   ;;  %s769_s0 = inlined_call_operand.vmem [shape: f32[128,10], index: 0, kind: input, shape index: {}]   ;;  %s770_s6 = inlined_call_operand.<no memory space> [shape: f32[1,1], index: 6, kind: input, shape index: {}]   ;;  %s771_s1 = inlined_call_operand.vmem [shape: f32[32,10], index: 1, kind: input, shape index: {}]   ;;  %s772_s2 = inlined_call_operand.vmem [shape: f32[32,1], index: 2, kind: input, shape index: {}]   ;;  %s773_s4 = inlined_call_operand.vmem [shape: f32[16,1], index: 4, kind: input, shape index: {}]   ;;  %s774_s3 = inlined_call_operand.vmem [shape: f32[16,32], index: 3, kind: input, shape index: {}]   ;;  %s775_s5 = inlined_call_operand.vmem [shape: f32[8,16], index: 5, kind: input, shape index: {}]   ;;  %s776_s7 = inlined_call_operand.vmem [shape: f32[1,128], index: 7, kind: output, shape index: {}]  }
   0x1   :  { %v28_v0 = vld [vmem:[%s769_s0] sm:$0xff]  ;;  %v29_v1 = vld [vmem:[%s769_s0 + $0x8] sm:$0xff]  ;;  %vm640_vm1 = vmpackc.low %vm72_vm0, %vm72_vm0  ;;  %582 = vset.pattern.permute.xlu0 %v588_v3  ;;  %583 = vset.pattern.permute.xlu1 %v588_v3  ;;  %v12_v4 = vstv %s770_s6  ;;  %vm590_vm3 = vmmov 0   ;;  %v591_v59 = vmov 0.0   ;;  %vm321_vm4 = vcmask 130048  }
   0x2   :  { %v519_v5 = vpack.c.bf16 %v29_v1, %v28_v0  ;;  %v30_v6 = vld [vmem:[%s769_s0 + $0x10] sm:$0xff]  ;;  %v31_v7 = vld [vmem:[%s769_s0 + $0x18] sm:$0xff]  ;;  %13 = vst [vmem:[#allocation2] sm:$0x1] %v12_v4  ;;  %v44_v9 = vld [vmem:[%s771_s1] sm:$0xff] }
   0x3   :  { %v525_v8 = vpack.c.bf16 %v31_v7, %v30_v6  ;;  %v32_v10 = vld [vmem:[%s769_s0 + $0x20] sm:$0xff]  ;;  %v33_v11 = vld [vmem:[%s769_s0 + $0x28] sm:$0xff]  ;;  %495 = vmatprep.mubr.msk.f32.mxu0 %vm72_vm0, %v44_v9  ;;  %v50_v13 = vld [vmem:[%s772_s2 + $0x10] sm:$0xff]  ;;  %v401_v6 = vlaneseq }
   0x4   :  { %521 = vmatprep.subr.msk.bf16.mxu0 %vm640_vm1, %v519_v5  ;;  %v48_v12 = vld [vmem:[%s772_s2] sm:$0xff]  ;;  %64 = vperm.xlu1 %583, %v50_v13   ;;  %v531_v14 = vpack.c.bf16 %v33_v11, %v32_v10  ;;  %v49_v15 = vld [vmem:[%s772_s2 + $0x8] sm:$0xff]  ;;  %v51_v16 = vld [vmem:[%s772_s2 + $0x18] sm:$0xff] }
   0x5   :  { %524 = vmatpush3.bf16.xpose.msk.msra.mxu0 %vm640_vm1, %v519_v5  ;;  %54 = vperm.xlu0 %582, %v48_v12   ;;  %v224_v17 = vld [vmem:[%s773_s4] sm:$0xff]  ;;  %v34_v18 = vld [vmem:[%s769_s0 + $0x30] sm:$0xff]  ;;  %v35_v19 = vld [vmem:[%s769_s0 + $0x38] sm:$0xff]  ;;  %v402_v7 = vshrl.u32 %v401_v6, 7 }
   0x6   :  { %527 = vmatprep.subr.msk.bf16.mxu0 %vm640_vm1, %v525_v8  ;;  %v225_v20 = vld [vmem:[%s773_s4 + $0x8] sm:$0xff]  ;;  %v537_v21 = vpack.c.bf16 %v35_v19, %v34_v18  ;;  %v36_v23 = vld [vmem:[%s769_s0 + $0x40] sm:$0xff]  ;;  %v38_v26 = vld [vmem:[%s769_s0 + $0x50] sm:$0xff] }
   0x7   :  { %v37_v24 = vld [vmem:[%s769_s0 + $0x48] sm:$0xff]  ;;  %v39_v27 = vld [vmem:[%s769_s0 + $0x58] sm:$0xff]  ;;  %v40_v29 = vld [vmem:[%s769_s0 + $0x60] sm:$0xff] }
   0x8   :  { %69 = vperm.xlu1 %583, %v51_v16   ;;  %v543_v25 = vpack.c.bf16 %v37_v24, %v36_v23  ;;  %v549_v28 = vpack.c.bf16 %v39_v27, %v38_v26  ;;  %v41_v30 = vld [vmem:[%s769_s0 + $0x68] sm:$0xff]  ;;  %v42_v32 = vld [vmem:[%s769_s0 + $0x70] sm:$0xff]  ;;  %v43_v33 = vld [vmem:[%s769_s0 + $0x78] sm:$0xff] }
   0x9   :  { %59 = vperm.xlu0 %582, %v49_v15   ;;  %v395_v22 = vld [vmem:[#allocation2] sm:$0x1]  ;;  %v555_v31 = vpack.c.bf16 %v41_v30, %v40_v29  ;;  %v561_v34 = vpack.c.bf16 %v43_v33, %v42_v32  ;;  %v45_v35 = vld [vmem:[%s771_s1 + $0x8] sm:$0xff]  ;;  %v46_v36 = vld [vmem:[%s771_s1 + $0x10] sm:$0xff] }
   0xa   :  { %v47_v37 = vld [vmem:[%s771_s1 + $0x18] sm:$0xff]  ;;  %v222_v38 = vld [vmem:[%s774_s3] sm:$0xff]  ;;  %v223_v57 = vld [vmem:[%s774_s3 + $0x8] sm:$0xff] }
   0xb   :  { %509 = vmatprep.mubr.msk.f32.mxu1 %vm236_vm2, %v222_v38  ;;  %v320_v5 = vld [vmem:[%s775_s5] sm:$0xff] }
   0xc   :  { %233 = vperm.xlu1 %583, %v225_v20  }
   0xd   :  { %530 = vmatpush3.bf16.xpose.msk.msra.mxu0 %vm640_vm1, %v525_v8  ;;  %228 = vperm.xlu0 %582, %v224_v17   ;;  %v403_v8 = vsub.s32 0, %v402_v7 }
   0xe   :  { %533 = vmatprep.subr.msk.bf16.mxu0 %vm640_vm1, %v531_v14 }
  0x11   :  { %398 = vperm.xlu0 %582, %v395_v22  }
  0x15   :  { %536 = vmatpush3.bf16.xpose.msk.msra.mxu0 %vm640_vm1, %v531_v14 }
  0x16   :  { %539 = vmatprep.subr.msk.bf16.mxu0 %vm640_vm1, %v537_v21 }
  0x1d   :  { %542 = vmatpush3.bf16.xpose.msk.msra.mxu0 %vm640_vm1, %v537_v21 }
  0x1e   :  { %545 = vmatprep.subr.msk.bf16.mxu0 %vm640_vm1, %v543_v25 }
  0x25   :  { %548 = vmatpush3.bf16.xpose.msk.msra.mxu0 %vm640_vm1, %v543_v25 }
  0x26   :  { %551 = vmatprep.subr.msk.bf16.mxu0 %vm640_vm1, %v549_v28 }
  0x2d   :  { %554 = vmatpush3.bf16.xpose.msk.msra.mxu0 %vm640_vm1, %v549_v28 }
  0x2e   :  { %557 = vmatprep.subr.msk.bf16.mxu0 %vm640_vm1, %v555_v31 }
  0x35   :  { %560 = vmatpush3.bf16.xpose.msk.msra.mxu0 %vm640_vm1, %v555_v31 }
  0x36   :  { %563 = vmatprep.subr.msk.bf16.mxu0 %vm640_vm1, %v561_v34 }
  0x3d   :  { %566 = vmatpush3.bf16.xpose.msk.msra.mxu0 %vm640_vm1, %v561_v34 }
  0x44   :  { %496 = vmatmul.mubr.msk.f32.vlgmr.msra.gmra.mrb[0].mxu0 %vm72_vm0, %v45_v35 }
  0x45   :  { %498 = vmatprep.mubr.msk.f32.mxu0 %vm72_vm0, %v46_v36 }
  0x48   :  { %499 = vmatmul.mubr.msk.f32.gmra.mrb[2].mxu0 %vm72_vm0, %v47_v37 }
  0x83   :  { %v65_v40 = vpop.permute.xlu1 %64 }
  0x84   :  { %v55_v39 = vpop.permute.xlu0 %54 }
  0x87   :  { %v70_v47 = vpop.permute.xlu1 %69 }
  0x88   :  { %v60_v41 = vpop.permute.xlu0 %59 }
  0x8b   :  { %v234_v60 = vpop.permute.xlu1 %233 }
  0x8c   :  { %v229_v62 = vpop.permute.xlu0 %228 }
  0x90   :  { %v399_v9 = vpop.permute.xlu0 %398 }
  0x91   :  { %v404_v10 = vrot.slane %v399_v9, %v403_v8 }
 0x117   :  { %v497_v42 = vpop.f32.mrb[0].mxu0 }
 0x118   :  { %v205_v43 = vadd.f32 %v497_v42, %v60_v41  ;;  %v199_v44 = vpop.f32.mrb[1].mxu0 }
 0x119   :  { %v200_v45 = vadd.f32 %v199_v44, %v55_v39 }
 0x11a   :  { %v219_v46 = vmax.f32 %v205_v43, 0.0 }
 0x11b   :  { %v218_v48 = vmax.f32 %v200_v45, 0.0  ;;  %v500_v49 = vpop.f32.mrb[2].mxu0 }
 0x11c   :  { %v215_v50 = vadd.f32 %v500_v49, %v70_v47  ;;  %v209_v51 = vpop.f32.mrb[3].mxu0 }
 0x11d   :  { %v210_v52 = vadd.f32 %v209_v51, %v65_v40  ;;  %v567_v53 = vpack.c.bf16 %v219_v46, %v218_v48 }
 0x11e   :  { %v221_v54 = vmax.f32 %v215_v50, 0.0 }
 0x11f   :  { %v220_v55 = vmax.f32 %v210_v52, 0.0  ;;  %568 = vmatprep.subr.bf16.mxu1 %v567_v53 }
 0x120   :  { %570 = vmatpush3.bf16.msra.mxu1 %v567_v53 }
 0x121   :  { %v571_v56 = vpack.c.bf16 %v221_v54, %v220_v55 }
 0x123   :  { %572 = vmatprep.subr.bf16.mxu1 %v571_v56 }
 0x124   :  { %574 = vmatpush3.bf16.msra.mxu1 %v571_v56 }
 0x125   :  { %575 = vmatprep.subr.bf16.mxu1 %v589_v58 }
 0x127   :  { %510 = vmatmul.mubr.msk.f32.vlgmr.msra.gmra.mrb[0].mxu1 %vm236_vm2, %v223_v57 }
 0x128   :  { %516 = vmatprep.mubr.msk.f32.mxu1 %vm590_vm3, %v591_v59 }
 0x1fa   :  { %v511_v61 = vpop.f32.mrb[0].mxu1 }
 0x1fb   :  { %v315_v63 = vadd.f32 %v511_v61, %v234_v60  ;;  %v309_v0 = vpop.f32.mrb[1].mxu1 }
 0x1fc   :  { %v310_v1 = vadd.f32 %v309_v0, %v229_v62 }
 0x1fd   :  { %584 = vtanh.f32 %v315_v63 }
 0x1fe   :  { %586 = vtanh.f32 %v310_v1 }
 0x207   :  { %v585_v2 = vpop.eup %584 }
 0x208   :  { %v587_v3 = vpop.eup %586 }
 0x209   :  { %v576_v4 = vpack.c.bf16 %v585_v2, %v587_v3 }
 0x20b   :  { %577 = vmatpush3.bf16.msra.mxu1 %v576_v4 }
 0x20e   :  { %517 = vmatmul.mubr.msk.f32.vlgmr.msra.gmra.mrb[2].mxu1 %vm321_vm4, %v320_v5 }
 0x2e1   :  { %v391_v11 = vpop.f32.mrb[2].mxu1 }
 0x2e2   :  { %v405_v12 = vadd.f32 %v404_v10, %v391_v11  ;;  %v518_v13 = vpop.f32.mrb[3].mxu1 }
 0x2e4   :  { %406 = vst [vmem:[%s776_s7] sm:$0x1] %v405_v12 }

</bundles_post_ra>
